<compile_context>
chip_gen: v6e
topology: v6e:2x2x1
jax: 0.10.0
libtpu: 0.0.40
codegen_flags: <defaults>
</compile_context>

<pallas_src>
import jax
import jax.numpy as jnp
from jax.experimental import pallas as pl
from jax.experimental.pallas import tpu as pltpu

INPUT_DIM = 4
HIDDEN = 128
LANE = 128                 # padded action dim (lane-dense output)
MAX_BLOCK_ROWS = 512       # cap block rows (vreg pressure + v5e scoped VMEM)
NEG_LARGE = -1e30          # f32-safe "-inf" for padded action logits (stays f32)

# Packed parameter slab layout: (PACK_ROWS, LANE) f32  (~68 KiB, VMEM-resident)
#   rows 0..3   : w1   (4, 128)
#   row  4      : b1   (128,)
#   row  5      : b2   (128,)  padded lanes = NEG_LARGE
#   rows 6..7   : zero padding (tile alignment)
#   rows 8..135 : w2   (128, 128)  padded columns = 0
ROW_B1 = INPUT_DIM
ROW_B2 = INPUT_DIM + 1
ROW_W2 = 8
PACK_ROWS = ROW_W2 + HIDDEN  # 136


def policy_kernel(x_ref, p_ref, o_ref):
    # x: (TB, 4) f32     p: (136, 128) f32 packed params     o: (TB, 128) f32
    x = x_ref[...]

    b1 = p_ref[ROW_B1:ROW_B1 + 1, :]            # (1, 128)
    b2 = p_ref[ROW_B2:ROW_B2 + 1, :]            # (1, 128), pad lanes = -1e30
    w2 = p_ref[ROW_W2:ROW_W2 + HIDDEN, :]       # (128, 128)

    # Linear(4, 128) on the VPU: K=4 contraction as 4 broadcast multiply-adds
    # (avoids a ~97%-padded MXU pass).  Loop is static -> fully unrolled.
    acc = x[:, 0:1] * p_ref[0:1, :]
    for k in range(1, INPUT_DIM):
        acc = acc + x[:, k:k + 1] * p_ref[k:k + 1, :]
    h = jnp.maximum(acc + b1, 0.0)              # ReLU

    # Linear(128, n_actions) on the MXU; padded columns get logit -1e30.
    logits = jnp.dot(h, w2, preferred_element_type=jnp.float32) + b2

    # Numerically-stable softmax over the last dim (nn.Softmax on 2-D -> dim=1).
    # Exact divide so rows sum to 1 (training path needs exact log-probs).
    m = jnp.max(logits, axis=-1, keepdims=True)
    e = jnp.exp(logits - m)
    s = jnp.sum(e, axis=-1, keepdims=True)
    o_ref[...] = (e / s).astype(o_ref.dtype)


def _pad_rows(b):
    """Bucket batch size (multiple of 8) to limit distinct compilations."""
    if b <= 8:
        return 8
    if b <= 1024:
        return 1 << (b - 1).bit_length()        # next power of two
    return ((b + 1023) // 1024) * 1024


def _block_rows(b_pad):
    """Keep >=2 parallel grid steps when possible (v7x dual TensorCores);
    cap block rows so even double-buffered tiles fit v5e's 16 MiB default."""
    if b_pad <= 8:
        return b_pad
    return min(b_pad // 2, MAX_BLOCK_ROWS)


@jax.jit
def _policy_apply_padded(xs_pad, packed):
    b_pad = xs_pad.shape[0]
    block = _block_rows(b_pad)
    grid = (b_pad // block,)
    return pl.pallas_call(
        policy_kernel,
        out_shape=jax.ShapeDtypeStruct((b_pad, LANE), jnp.float32),
        grid=grid,
        in_specs=[
            pl.BlockSpec((block, INPUT_DIM), lambda i: (i, 0)),    # x tile
            pl.BlockSpec((PACK_ROWS, LANE), lambda i: (0, 0)),     # params (resident)
        ],
        out_specs=pl.BlockSpec((block, LANE), lambda i: (i, 0)),
        compiler_params=pltpu.CompilerParams(
            dimension_semantics=("parallel",),
        ),
    )(xs_pad, packed)


def policy_net_apply(xs, params):
    """Batched forward: xs (B, 4) -> probs (B, n_actions)."""
    packed, n_actions = params
    xs = jnp.asarray(xs, jnp.float32).reshape(-1, INPUT_DIM)
    b = xs.shape[0]
    b_pad = _pad_rows(b)
    if b_pad != b:                       # skip pad on the hot (bucketed) path
        xs = jnp.pad(xs, ((0, b_pad - b), (0, 0)))
    out = _policy_apply_padded(xs, packed)
    if b_pad != b:
        out = out[:b]
    return out[:, :n_actions]


def policy_net_forward(x, params):
    """Equivalent of PolicyNet.forward: x.view(1, -1) -> fc(x)."""
    return policy_net_apply(jnp.asarray(x).reshape(1, -1), params)


def init_params(key, input_dim=INPUT_DIM, hidden=HIDDEN, n_actions=2):
    """PyTorch nn.Linear-style init (U(-1/sqrt(fan_in), +)), stored (in, out)
    so the kernel computes y = x @ W + b, packed into one VMEM-resident slab."""
    assert input_dim == INPUT_DIM and hidden == HIDDEN and 0 < n_actions <= LANE
    k1, k2, k3, k4 = jax.random.split(key, 4)
    lim1 = 1.0 / (input_dim ** 0.5)
    lim2 = 1.0 / (hidden ** 0.5)
    w1 = jax.random.uniform(k1, (input_dim, hidden), jnp.float32, -lim1, lim1)
    b1 = jax.random.uniform(k2, (hidden,), jnp.float32, -lim1, lim1)
    w2 = jax.random.uniform(k3, (hidden, n_actions), jnp.float32, -lim2, lim2)
    b2 = jax.random.uniform(k4, (n_actions,), jnp.float32, -lim2, lim2)

    b2_row = jnp.full((LANE,), NEG_LARGE, jnp.float32).at[:n_actions].set(b2)
    packed = jnp.zeros((PACK_ROWS, LANE), jnp.float32)
    packed = packed.at[0:input_dim, :].set(w1)
    packed = packed.at[ROW_B1, :].set(b1)
    packed = packed.at[ROW_B2, :].set(b2_row)
    packed = packed.at[ROW_W2:ROW_W2 + hidden, :n_actions].set(w2)
    return packed, n_actions


if __name__ == "__main__":
    key = jax.random.PRNGKey(0)
    k_param, k_x, k_xs = jax.random.split(key, 3)

    n_actions = 2
    params = init_params(k_param, n_actions=n_actions)
    packed, _ = params

    # Pure-JAX f32 reference (unpack the packed slab).
    w1_ref = packed[0:INPUT_DIM, :]
    b1_ref = packed[ROW_B1, :]
    w2_ref = packed[ROW_W2:ROW_W2 + HIDDEN, :n_actions]
    b2_ref = packed[ROW_B2, :n_actions]

    def ref_forward(xs):
        h = jnp.maximum(xs @ w1_ref + b1_ref, 0.0)
        return jax.nn.softmax(h @ w2_ref + b2_ref, axis=-1)

    # Original module semantics: single CartPole-like 4-element state.
    x = jax.random.normal(k_x, (INPUT_DIM,), dtype=jnp.float32)
    out1 = jax.block_until_ready(policy_net_forward(x, params))
    assert out1.shape == (1, n_actions)
    assert jnp.allclose(out1, ref_forward(x.reshape(1, -1)), atol=1e-3, rtol=1e-3)
    assert jnp.allclose(jnp.sum(out1, axis=-1), 1.0, atol=1e-3)
    assert bool(jnp.all(out1 >= 0.0))

    # Batched path: 16 states in one pallas_call (grid=(2,) -> both v7x TCs).
    xs = jax.random.normal(k_xs, (16, INPUT_DIM), dtype=jnp.float32)
    outb = jax.block_until_ready(policy_net_apply(xs, params))
    assert outb.shape == (16, n_actions)
    assert jnp.allclose(outb, ref_forward(xs), atol=1e-3, rtol=1e-3)
    assert jnp.allclose(jnp.sum(outb, axis=-1), 1.0, atol=1e-3)
    assert bool(jnp.all(outb >= 0.0))

    print("KERNEL_OK")
</pallas_src>

<mosaic_0001>
module attributes {stable_mosaic.version = 11 : i64} {
  func.func @policy_kernel(%arg0: i32, %arg1: memref<8x4xf32, #tpu.memory_space<vmem>>, %arg2: memref<136x128xf32, #tpu.memory_space<vmem>>, %arg3: memref<8x128xf32, #tpu.memory_space<vmem>>) attributes {dimension_semantics = [#tpu.dimension_semantics<parallel>], iteration_bounds = array<i64: 1>, scalar_prefetch = 0 : i64, scratch_operands = 0 : i64, tpu.core_type = #tpu.core_type<tc>, window_params = [{transform_indices = @transform_0, window_bounds = array<i64: 8, 4>}, {pipeline_mode = #tpu.pipeline_mode<synchronous>, transform_indices = @transform_1, window_bounds = array<i64: 136, 128>}, {transform_indices = @transform_2, window_bounds = array<i64: 8, 128>}]} {
    %c0 = arith.constant 0 : index
    %c0_0 = arith.constant 0 : index
    %0 = vector.load %arg1[%c0, %c0_0] : memref<8x4xf32, #tpu.memory_space<vmem>>, vector<8x4xf32>
    %c4 = arith.constant 4 : index
    %c0_1 = arith.constant 0 : index
    %1 = vector.load %arg2[%c4, %c0_1] : memref<136x128xf32, #tpu.memory_space<vmem>>, vector<1x128xf32>
    %c5 = arith.constant 5 : index
    %c0_2 = arith.constant 0 : index
    %2 = vector.load %arg2[%c5, %c0_2] : memref<136x128xf32, #tpu.memory_space<vmem>>, vector<1x128xf32>
    %c8 = arith.constant 8 : index
    %c0_3 = arith.constant 0 : index
    %3 = vector.load %arg2[%c8, %c0_3] : memref<136x128xf32, #tpu.memory_space<vmem>>, vector<128x128xf32>
    %4 = vector.extract_strided_slice %0 {offsets = [0, 0], sizes = [8, 1], strides = [1, 1]} : vector<8x4xf32> to vector<8x1xf32>
    %c0_4 = arith.constant 0 : index
    %c0_5 = arith.constant 0 : index
    %5 = vector.load %arg2[%c0_4, %c0_5] : memref<136x128xf32, #tpu.memory_space<vmem>>, vector<1x128xf32>
    %6 = vector.broadcast %4 : vector<8x1xf32> to vector<8x128xf32>
    %7 = vector.broadcast %5 : vector<1x128xf32> to vector<8x128xf32>
    %8 = arith.mulf %6, %7 : vector<8x128xf32>
    %9 = vector.extract_strided_slice %0 {offsets = [0, 1], sizes = [8, 1], strides = [1, 1]} : vector<8x4xf32> to vector<8x1xf32>
    %c1 = arith.constant 1 : index
    %c0_6 = arith.constant 0 : index
    %10 = vector.load %arg2[%c1, %c0_6] : memref<136x128xf32, #tpu.memory_space<vmem>>, vector<1x128xf32>
    %11 = vector.broadcast %9 : vector<8x1xf32> to vector<8x128xf32>
    %12 = vector.broadcast %10 : vector<1x128xf32> to vector<8x128xf32>
    %13 = arith.mulf %11, %12 : vector<8x128xf32>
    %14 = arith.addf %8, %13 : vector<8x128xf32>
    %15 = vector.extract_strided_slice %0 {offsets = [0, 2], sizes = [8, 1], strides = [1, 1]} : vector<8x4xf32> to vector<8x1xf32>
    %c2 = arith.constant 2 : index
    %c0_7 = arith.constant 0 : index
    %16 = vector.load %arg2[%c2, %c0_7] : memref<136x128xf32, #tpu.memory_space<vmem>>, vector<1x128xf32>
    %17 = vector.broadcast %15 : vector<8x1xf32> to vector<8x128xf32>
    %18 = vector.broadcast %16 : vector<1x128xf32> to vector<8x128xf32>
    %19 = arith.mulf %17, %18 : vector<8x128xf32>
    %20 = arith.addf %14, %19 : vector<8x128xf32>
    %21 = vector.extract_strided_slice %0 {offsets = [0, 3], sizes = [8, 1], strides = [1, 1]} : vector<8x4xf32> to vector<8x1xf32>
    %c3 = arith.constant 3 : index
    %c0_8 = arith.constant 0 : index
    %22 = vector.load %arg2[%c3, %c0_8] : memref<136x128xf32, #tpu.memory_space<vmem>>, vector<1x128xf32>
    %23 = vector.broadcast %21 : vector<8x1xf32> to vector<8x128xf32>
    %24 = vector.broadcast %22 : vector<1x128xf32> to vector<8x128xf32>
    %25 = arith.mulf %23, %24 : vector<8x128xf32>
    %26 = arith.addf %20, %25 : vector<8x128xf32>
    %27 = vector.broadcast %1 : vector<1x128xf32> to vector<8x128xf32>
    %28 = arith.addf %26, %27 : vector<8x128xf32>
    %cst = arith.constant 0.000000e+00 : f32
    %29 = vector.broadcast %cst : f32 to vector<8x128xf32>
    %30 = arith.maximumf %28, %29 : vector<8x128xf32>
    %cst_9 = arith.constant dense<0.000000e+00> : vector<8x128xf32>
    %31 = tpu.matmul %30, %3, %cst_9 {dimension_numbers = #tpu.dot_dimension_numbers<[1], [0], [0], [1], [0, 0, 1, 1], [], []>} : vector<8x128xf32>, vector<128x128xf32>, vector<8x128xf32> -> vector<8x128xf32>
    %32 = vector.broadcast %2 : vector<1x128xf32> to vector<8x128xf32>
    %33 = arith.addf %31, %32 : vector<8x128xf32>
    %cst_10 = arith.constant dense<0xFF800000> : vector<8xf32>
    %34 = vector.multi_reduction <maximumf>, %33, %cst_10 [1] : vector<8x128xf32> to vector<8xf32>
    %35 = vector.shape_cast %34 : vector<8xf32> to vector<8x1xf32>
    %36 = vector.broadcast %35 : vector<8x1xf32> to vector<8x128xf32>
    %37 = arith.subf %33, %36 : vector<8x128xf32>
    %38 = math.exp %37 : vector<8x128xf32>
    %cst_11 = arith.constant dense<0.000000e+00> : vector<8xf32>
    %39 = vector.multi_reduction <add>, %38, %cst_11 [1] : vector<8x128xf32> to vector<8xf32>
    %40 = vector.shape_cast %39 : vector<8xf32> to vector<8x1xf32>
    %41 = vector.broadcast %40 : vector<8x1xf32> to vector<8x128xf32>
    %42 = arith.divf %38, %41 : vector<8x128xf32>
    %c0_12 = arith.constant 0 : index
    %c0_13 = arith.constant 0 : index
    %43 = vector.load %arg3[%c0_12, %c0_13] : memref<8x128xf32, #tpu.memory_space<vmem>>, vector<8x128xf32>
    tpu.vector_store %arg3[%c0_12, %c0_13], %42 {strides = array<i32>} : memref<8x128xf32, #tpu.memory_space<vmem>>, vector<8x128xf32>,
    return
  }
  func.func @transform_0(%arg0: i32) -> (i32, i32) {
    %c0_i32 = arith.constant 0 : i32
    %c0_i32_0 = arith.constant 0 : i32
    return %arg0, %c0_i32 : i32, i32
  }
  func.func @transform_1(%arg0: i32) -> (i32, i32) {
    %c0_i32 = arith.constant 0 : i32
    %c0_i32_0 = arith.constant 0 : i32
    %c0_i32_1 = arith.constant 0 : i32
    return %c0_i32, %c0_i32_0 : i32, i32
  }
  func.func @transform_2(%arg0: i32) -> (i32, i32) {
    %c0_i32 = arith.constant 0 : i32
    %c0_i32_0 = arith.constant 0 : i32
    return %arg0, %c0_i32 : i32, i32
  }
}

</mosaic_0001>

<bundles_post_ra>
// kernel: _policy_apply_padded.1
= control target key start
LH: loop header
LB: loop body
LE: loop exit
PB: predicated region body
PF: predicated region fallthrough
CT: control target
= control target key end

     0   :  { %7 = vsyncpa [#allocation3], 0  ;;  %s349_s0 = inlined_call_operand.vmem [shape: f32[8,4], index: 0, kind: input, shape index: {}]   ;;  %s350_s1 = inlined_call_operand.hbm [shape: f32[136,128], index: 1, kind: input, shape index: {}]   ;;  %s351_s2 = inlined_call_operand.hbm [shape: f32[8,128], index: 2, kind: output, shape index: {}]  }
   0x1   :  { %8 = vsyncpa [#allocation4], 0  ;;  %s315_s9 = smov [#allocation2]  }
   0x2   :  { %s16_s10 = sshll.u32 %s315_s9, 4  ;;  %s17_s10 = int_to_ptr.vmem [resolvable:$true] %s16_s10 }
   0x3   :  { %s279_s11 = scalar_lea.vmem %s17_s10, 2176  ;;  %p284_p1 = scmp.lt.s32.totalorder %s17_s10, %s17_s10 }
   0x4   :  { %p280_p0 = scmp.ne.s32.totalorder %s17_s10, %s279_s11  ;;  %p285_p2 = scmp.lt.s32.totalorder %s279_s11, %s279_s11 }
   0x6   :  { %p286_p3 = por %p285_p2, %p284_p1 }
   0x8   :  { %p287_p4 = pnand %p286_p3, %p280_p0 }
   0xa   :  { %290 = shalt.err (!%p287_p4)
}
   0xb   :  { %s316_s12 = smov 128   ;;  %s317_s13 = smov 8  }
   0xc   :  { %22 = dma.hbm_to_vmem [thread:$0]  %s350_s1, 2176, %s17_s10, [#allocation3], %s316_s12, %s316_s12, %s317_s13  }
   0xd   :  { %311 = dma.done.wait [#allocation3], 2176  }
   0xe   :  { %312 = vsyncadd [#allocation3], 4294965120  ;;  %v318_v0 = vmov 0   ;;  %v319_v1 = vmov 2   ;;  %v320_v2 = vmov 0.0   ;;  %v26_v3 = vld [vmem:[%s349_s0] sm:$0xff] }
   0xf   :  { %262 = vset.pattern.permute.xlu0 %v318_v0  ;;  %264 = vset.pattern.permute.xlu1 %v319_v1  ;;  %v44_v4 = vld [vmem:[#allocation2 + $0x80] sm:$0xff]  ;;  %v43_v5 = vld [vmem:[#allocation2 + $0x78] sm:$0xff]  ;;  %v321_v6 = vmov 1   ;;  %v322_v7 = vmov 3   ;;  %v42_v8 = vld [vmem:[#allocation2 + $0x70] sm:$0xff]  ;;  %vm323_vm0 = vmmov 0  }
  0x10   :  { %217 = vmatprep.subr.mxu0 %v320_v2  ;;  %48 = vperm.xlu0 %262, %v26_v3   ;;  %v41_v9 = vld [vmem:[#allocation2 + $0x68] sm:$0xff]  ;;  %v40_v10 = vld [vmem:[#allocation2 + $0x60] sm:$0xff]  ;;  %v39_v11 = vld [vmem:[#allocation2 + $0x58] sm:$0xff]  ;;  %s324_s0 = smov [#allocation5]  }
  0x11   :  { %69 = vperm.xlu1 %264, %v26_v3   ;;  %218 = vmatpush3.msra.mxu0 %v44_v4  ;;  %v38_v12 = vld [vmem:[#allocation2 + $0x50] sm:$0xff]  ;;  %v37_v13 = vld [vmem:[#allocation2 + $0x48] sm:$0xff]  ;;  %v36_v14 = vld [vmem:[#allocation2 + $0x40] sm:$0xff]  ;;  %s185_s1 = sshll.u32 %s324_s0, 4  ;;  %s186_s1 = int_to_ptr.vmem [resolvable:$true] %s185_s1 }
  0x12   :  { %219 = vmatprep.subr.mxu0 %v320_v2  ;;  %249 = vmatprep.mubr.msk.f32.mxu0 %vm323_vm0, %v320_v2  ;;  %v35_v15 = vld [vmem:[#allocation2 + $0x38] sm:$0xff]  ;;  %v34_v16 = vld [vmem:[#allocation2 + $0x30] sm:$0xff]  ;;  %v33_v17 = vld [vmem:[#allocation2 + $0x28] sm:$0xff]  ;;  %s291_s18 = scalar_lea.vmem %s186_s1, 128  ;;  %p296_p6 = scmp.lt.s32.totalorder %s186_s1, %s186_s1 }
  0x13   :  { %220 = vmatpush3.msra.mxu0 %v43_v5  ;;  %v32_v18 = vld [vmem:[#allocation2 + $0x20] sm:$0xff]  ;;  %v31_v19 = vld [vmem:[#allocation2 + $0x18] sm:$0xff]  ;;  %v30_v20 = vld [vmem:[#allocation2 + $0x10] sm:$0xff]  ;;  %p292_p5 = scmp.ne.s32.totalorder %s186_s1, %s291_s18  ;;  %p297_p7 = scmp.lt.s32.totalorder %s291_s18, %s291_s18 }
  0x14   :  { %263 = vset.pattern.permute.xlu0 %v321_v6  ;;  %221 = vmatprep.subr.mxu0 %v320_v2  ;;  %v29_v21 = vld [vmem:[#allocation2 + $0x8] sm:$0xff]  ;;  %v194_v24 = vld [vmem:[#allocation2] ss:$0 sm:$0xff]  ;;  %v195_v25 = vld [vmem:[#allocation2 + $0x1] ss:$0 sm:$0xff] }
  0x15   :  { %265 = vset.pattern.permute.xlu1 %v322_v7  ;;  %58 = vperm.xlu0 %263, %v26_v3   ;;  %v196_v26 = vld [vmem:[#allocation2 + $0x2] ss:$0 sm:$0xff]  ;;  %v197_v28 = vld [vmem:[#allocation2 + $0x3] ss:$0 sm:$0xff]  ;;  %v198_v36 = vld [vmem:[#allocation2 + $0x4] ss:$0 sm:$0xff]  ;;  %p298_p8 = por %p297_p7, %p296_p6 }
  0x16   :  { %80 = vperm.xlu1 %265, %v26_v3   ;;  %222 = vmatpush3.msra.mxu0 %v42_v8  ;;  %v199_v40 = vld [vmem:[#allocation2 + $0x5] ss:$0 sm:$0xff] }
  0x17   :  { %223 = vmatprep.subr.mxu0 %v320_v2  ;;  %p299_p9 = pnand %p298_p8, %p292_p5 }
  0x18   :  { %224 = vmatpush3.msra.mxu0 %v41_v9 }
  0x19   :  { %266 = vset.pattern.permute.xlu0 %v322_v7  ;;  %225 = vmatprep.subr.mxu0 %v320_v2 }
  0x1a   :  { %226 = vmatpush3.msra.mxu0 %v40_v10 }
  0x1b   :  { %227 = vmatprep.subr.mxu0 %v320_v2 }
  0x1c   :  { %228 = vmatpush3.msra.mxu0 %v39_v11 }
  0x1d   :  { %229 = vmatprep.subr.mxu0 %v320_v2 }
  0x1e   :  { %230 = vmatpush3.msra.mxu0 %v38_v12 }
  0x1f   :  { %231 = vmatprep.subr.mxu0 %v320_v2 }
  0x20   :  { %232 = vmatpush3.msra.mxu0 %v37_v13 }
  0x21   :  { %233 = vmatprep.subr.mxu0 %v320_v2 }
  0x22   :  { %234 = vmatpush3.msra.mxu0 %v36_v14 }
  0x23   :  { %235 = vmatprep.subr.mxu0 %v320_v2 }
  0x24   :  { %236 = vmatpush3.msra.mxu0 %v35_v15 }
  0x25   :  { %237 = vmatprep.subr.mxu0 %v320_v2 }
  0x26   :  { %238 = vmatpush3.msra.mxu0 %v34_v16 }
  0x27   :  { %239 = vmatprep.subr.mxu0 %v320_v2 }
  0x28   :  { %240 = vmatpush3.msra.mxu0 %v33_v17 }
  0x29   :  { %241 = vmatprep.subr.mxu0 %v320_v2 }
  0x2a   :  { %242 = vmatpush3.msra.mxu0 %v32_v18 }
  0x2b   :  { %243 = vmatprep.subr.mxu0 %v320_v2 }
  0x2c   :  { %244 = vmatpush3.msra.mxu0 %v31_v19 }
  0x2d   :  { %245 = vmatprep.subr.mxu0 %v320_v2 }
  0x2e   :  { %246 = vmatpush3.msra.mxu0 %v30_v20 }
  0x2f   :  { %247 = vmatprep.subr.mxu0 %v320_v2 }
  0x30   :  { %248 = vmatpush3.msra.mxu0 %v29_v21 }
  0x8b   :  { %v49_v22 = vpop.permute.xlu0 %48 }
  0x8c   :  { %v70_v23 = vpop.permute.xlu1 %69  ;;  %v55_v30 = vmul.f32 %v194_v24, %v49_v22 }
  0x8d   :  { %v76_v32 = vmul.f32 %v196_v26, %v70_v23 }
  0x90   :  { %v59_v27 = vpop.permute.xlu0 %58 }
  0x91   :  { %v81_v29 = vpop.permute.xlu1 %80  ;;  %v65_v31 = vmul.f32 %v195_v25, %v59_v27 }
  0x92   :  { %v87_v34 = vmul.f32 %v197_v28, %v81_v29 }
  0x93   :  { %v66_v33 = vadd.f32 %v65_v31, %v55_v30 }
  0x95   :  { %v77_v35 = vadd.f32 %v76_v32, %v66_v33 }
  0x97   :  { %v88_v37 = vadd.f32 %v87_v34, %v77_v35 }
  0x99   :  { %v93_v38 = vadd.f32 %v198_v36, %v88_v37 }
  0x9b   :  { %v94_v39 = vmax.f32 %v93_v38, 0.0 }
  0x9d   :  { %250 = vmatmul.mubr.f32.vlgmr.msra.gmra.mxu0 %v94_v39 }
 0x15d   :  { %v165_v41 = vpop.f32.mrf.mxu0 }
 0x15e   :  { %v166_v42 = vadd.f32 %v199_v40, %v165_v41 }
 0x15f   :  { %v251_v43 = vpop.f32.mrf.mxu0 }
 0x160   :  { %169 = vmax.xlane.f32.xlu1 %v166_v42 }
 0x1e9   :  { %v170_v44 = vpop.xlane.xlu1 %169 }
 0x1ea   :  { %v171_v45 = vsub.f32 %v166_v42, %v170_v44 }
 0x1ec   :  { %v172_v46 = vmul.f32 1.442695, %v171_v45 }
 0x1ee   :  { %267 = vpow2.f32 %v172_v46 }
 0x1fb   :  { %v268_v47 = vpop.eup %267 }
 0x1fc   :  { %174 = vadd.xlane.f32.xlu0 %v268_v47 }
 0x285   :  { %v175_v48 = vpop.xlane.xlu0 %174 }
 0x286   :  { %269 = vrcp.f32 %v175_v48 }
 0x293   :  { %v270_v49 = vpop.eup %269 }
 0x294   :  { %v177_v50 = vmul.f32 %v270_v49, %v268_v47 }
 0x296   :  { %178 = vst [vmem:[#allocation5] sm:$0xff] %v177_v50 }
 0x297   :  { %302 = shalt.err (!%p299_p9)
}
 0x298   :  { %188 = dma.vmem_to_hbm [thread:$0]  %s186_s1, 128, %s351_s2, [#allocation4]  }
 0x299   :  { %313 = dma.done.wait [#allocation4], 128  }
 0x29a   :  { %314 = vsyncadd [#allocation4], 4294967168 }
 0x29b   :  { %192 = vsyncpa [#allocation3], 1 }
 0x29c   :  { %193 = vsyncpa [#allocation4], 1 }

</bundles_post_ra>
